<compile_context>
chip_gen: v5e
topology: v5e:2x2
jax: 0.10.0
libtpu: 0.0.40
codegen_flags: <defaults>
</compile_context>

<pallas_src>
import numpy as np
import jax
import jax.numpy as jnp
from jax.experimental import pallas as pl
from jax.experimental.pallas import tpu as pltpu


def _get_sinusoid_encoding_table(position_num: int, hidden_size: int) -> np.ndarray:
    """Identical math to the PyTorch module's _get_sinusoid_encoding_table."""
    def get_position_angle_vec(position):
        return [position / np.power(10000, 2 * (hid_i // 2) / hidden_size)
                for hid_i in range(hidden_size)]
    sinusoid_table = np.array([get_position_angle_vec(pos_i)
                               for pos_i in range(position_num)])
    sinusoid_table[:, 0::2] = np.sin(sinusoid_table[:, 0::2])
    sinusoid_table[:, 1::2] = np.cos(sinusoid_table[:, 1::2])
    return sinusoid_table.astype(np.float32)  # (position_num, hidden_size)


def _pos_add_kernel(x_ref, pos_ref, o_ref):
    # x_ref / o_ref: (tB, tL) lane-dense tiles.
    # pos_ref:       (1, tL) shared tile, broadcast over the batch (sublane)
    #                axis by the VPU add — pure elementwise work, no MXU/XLU.
    o_ref[...] = x_ref[...] + pos_ref[...]


def _largest_dividing_tile(total: int, unit: int, cap: int) -> int:
    """Largest multiple of `unit` that divides `total` and is <= `cap`.
    Falls back to `total` (full extent — always a legal block size)."""
    if total <= cap:
        return total
    t = (cap // unit) * unit
    while t >= unit:
        if total % t == 0:
            return t
        t -= unit
    return total


def positional_encoding(x: jax.Array, pos_table: jax.Array) -> jax.Array:
    """x: (B, S, H); pos_table: (P, H) with P >= S. Returns x + pos_table[:S]."""
    B, S, H = x.shape
    L = S * H

    # Glue (same as pos_table[:, :x.size(1)] in the PyTorch forward): static
    # slice + cast to the activation dtype before the kernel.
    pos = pos_table[:S, :].astype(x.dtype)

    # Lane-dense views: (B, S*H) activation slab and a (1, S*H) pos row.
    x2 = x.reshape(B, L)
    pos2 = pos.reshape(1, L)

    itemsize = jnp.dtype(x.dtype).itemsize
    TB_CAP = 8  # one sublane group of batch rows per tile is plenty (mem-bound)
    # Working set per grid step ~= 2 buffers * (x_tile + out_tile + pos_tile)
    #                            = 2 * (2*tB + 1) * tL * itemsize.
    # Keep it under ~12 MiB so it fits every chip's scoped-VMEM default.
    VMEM_BUDGET = 12 * 1024 * 1024
    lane_cap = VMEM_BUDGET // (2 * (2 * TB_CAP + 1) * itemsize)
    lane_cap = max(128, (lane_cap // 128) * 128)

    tB = _largest_dividing_tile(B, 8, TB_CAP)
    tL = _largest_dividing_tile(L, 128, lane_cap)
    nB = B // tB
    nL = L // tL

    out2 = pl.pallas_call(
        _pos_add_kernel,
        out_shape=jax.ShapeDtypeStruct((B, L), x.dtype),
        grid_spec=pltpu.PrefetchScalarGridSpec(
            num_scalar_prefetch=0,
            # Batch is the innermost (fastest-varying) grid axis; the pos block
            # index is constant along it, so the pos tile is not re-fetched for
            # every batch tile.
            grid=(nL, nB),
            in_specs=[
                pl.BlockSpec((tB, tL), lambda l, b: (b, l)),   # x tile
                pl.BlockSpec((1, tL), lambda l, b: (0, l)),    # shared pos tile
            ],
            out_specs=pl.BlockSpec((tB, tL), lambda l, b: (b, l)),
        ),
        compiler_params=pltpu.CompilerParams(
            dimension_semantics=("parallel", "parallel"),
            vmem_limit_bytes=32 * 1024 * 1024,
        ),
    )(x2, pos2)

    return out2.reshape(B, S, H)


if __name__ == "__main__":
    # Small shapes consistent with the module: hidden_size=32, position_num=16,
    # input sequence length 8 (<= position_num), batch 2.
    hidden_size = 32
    position_num = 16
    B, S = 2, 8

    pos_table = jnp.asarray(_get_sinusoid_encoding_table(position_num, hidden_size))

    key = jax.random.PRNGKey(0)
    x = jax.random.normal(key, (B, S, hidden_size), dtype=jnp.float32)

    out = positional_encoding(x, pos_table)
    out = jax.block_until_ready(out)

    # Reference check in plain JAX (same semantics as the PyTorch forward).
    ref = x + pos_table[None, :S, :]
    assert out.shape == (B, S, hidden_size)
    assert jnp.allclose(out, ref, atol=1e-6), "mismatch vs reference"

    print("KERNEL_OK")
</pallas_src>

<mosaic_0001>
module attributes {stable_mosaic.version = 11 : i64} {
  func.func @_pos_add_kernel(%arg0: i32, %arg1: i32, %arg2: memref<2x256xf32, #tpu.memory_space<vmem>>, %arg3: memref<1x256xf32, #tpu.memory_space<vmem>>, %arg4: memref<2x256xf32, #tpu.memory_space<vmem>>) attributes {dimension_semantics = [#tpu.dimension_semantics<parallel>, #tpu.dimension_semantics<parallel>], iteration_bounds = array<i64: 1, 1>, scalar_prefetch = 0 : i64, scratch_operands = 0 : i64, tpu.core_type = #tpu.core_type<tc>, window_params = [{transform_indices = @transform_0, window_bounds = array<i64: 2, 256>}, {transform_indices = @transform_1, window_bounds = array<i64: 1, 256>}, {transform_indices = @transform_2, window_bounds = array<i64: 2, 256>}]} {
    %c0 = arith.constant 0 : index
    %c0_0 = arith.constant 0 : index
    %0 = vector.load %arg2[%c0, %c0_0] : memref<2x256xf32, #tpu.memory_space<vmem>>, vector<2x256xf32>
    %c0_1 = arith.constant 0 : index
    %c0_2 = arith.constant 0 : index
    %1 = vector.load %arg3[%c0_1, %c0_2] : memref<1x256xf32, #tpu.memory_space<vmem>>, vector<1x256xf32>
    %2 = vector.broadcast %1 : vector<1x256xf32> to vector<2x256xf32>
    %3 = arith.addf %0, %2 : vector<2x256xf32>
    %c0_3 = arith.constant 0 : index
    %c0_4 = arith.constant 0 : index
    %4 = vector.load %arg4[%c0_3, %c0_4] : memref<2x256xf32, #tpu.memory_space<vmem>>, vector<2x256xf32>
    tpu.vector_store %arg4[%c0_3, %c0_4], %3 {strides = array<i32>} : memref<2x256xf32, #tpu.memory_space<vmem>>, vector<2x256xf32>,
    return
  }
  func.func @transform_0(%arg0: i32, %arg1: i32) -> (i32, i32) {
    %c0_i32 = arith.constant 0 : i32
    return %arg1, %arg0 : i32, i32
  }
  func.func @transform_1(%arg0: i32, %arg1: i32) -> (i32, i32) {
    %c0_i32 = arith.constant 0 : i32
    %c0_i32_0 = arith.constant 0 : i32
    return %c0_i32, %arg0 : i32, i32
  }
  func.func @transform_2(%arg0: i32, %arg1: i32) -> (i32, i32) {
    %c0_i32 = arith.constant 0 : i32
    return %arg1, %arg0 : i32, i32
  }
}

</mosaic_0001>

<bundles_post_ra>
// kernel: tpu_custom_call.1
= control target key start
LH: loop header
LB: loop body
LE: loop exit
PB: predicated region body
PF: predicated region fallthrough
CT: control target
= control target key end

     0   :  { %7 = vsyncpa [#allocation3], 0  ;;  %s177_s0 = inlined_call_operand.hbm [shape: f32[2,256], index: 0, kind: input, shape index: {}]   ;;  %s178_s1 = inlined_call_operand.hbm [shape: f32[1,256], index: 1, kind: input, shape index: {}]   ;;  %s179_s2 = inlined_call_operand.hbm [shape: f32[2,256], index: 2, kind: output, shape index: {}]  }
   0x1   :  { %8 = vsyncpa [#allocation6], 0 }
   0x2   :  { %9 = vsyncpa [#allocation4], 0  ;;  %s15_s11 = sshll.u32 %s177_s0, 4  ;;  %s150_s12 = smov [#allocation2]   ;;  %s16_s11 = int_to_ptr.hbm [resolvable:$true] %s15_s11 }
   0x3   :  { %s17_s13 = sshll.u32 %s150_s12, 4  ;;  %s26_s16 = sshll.u32 %s178_s1, 4  ;;  %s18_s13 = int_to_ptr.vmem [resolvable:$true] %s17_s13  ;;  %s27_s16 = int_to_ptr.hbm [resolvable:$true] %s26_s16 }
   0x4   :  { %20 = dma.hbm_to_vmem [thread:$0]  %s16_s11, 64, %s18_s13, [#allocation3]  }
   0x5   :  { %s151_s17 = smov [#allocation5]  }
   0x6   :  { %s28_s18 = sshll.u32 %s151_s17, 4  ;;  %s29_s18 = int_to_ptr.vmem [resolvable:$true] %s28_s18 }
   0x7   :  { %31 = dma.hbm_to_vmem [thread:$0]  %s27_s16, 32, %s29_s18, [#allocation6]  }
   0x8   :  { %144 = dma.done.wait [#allocation3], 64  }
   0x9   :  { %145 = vsyncadd [#allocation3], 4294967232 }
   0xa   :  { %146 = dma.done.wait [#allocation6], 32  }
   0xb   :  { %147 = vsyncadd [#allocation6], 4294967264  ;;  %v41_v0 = vld [vmem:[#allocation5] sm:$0x3]  ;;  %vm46_vm0 = vcmask 1041408   ;;  %s152_s0 = smov [#allocation7]  }
   0xc   :  { %v43_v1 = vperm.slane %v41_v0, 0  ;;  %v44_v2 = vperm.slane %v41_v0, 1  ;;  %v40_v3 = vld [vmem:[#allocation2] sm:$0xf]  ;;  %s56_s19 = sshll.u32 %s152_s0, 4  ;;  %s58_s21 = sshll.u32 %s179_s2, 4  ;;  %s57_s19 = int_to_ptr.vmem [resolvable:$true] %s56_s19  ;;  %s59_s21 = int_to_ptr.hbm [resolvable:$true] %s58_s21 }
   0xe   :  { %v45_v4 = vrot.slane %v44_v2, 6 }
  0x10   :  { %v47_v5 = vsel %vm46_vm0, %v43_v1, %v45_v4 }
  0x11   :  { %v49_v6 = vadd.f32 %v47_v5, %v40_v3 }
  0x13   :  { %50 = vst [vmem:[#allocation7] sm:$0xf] %v49_v6 }
  0x14   :  { %61 = dma.vmem_to_hbm [thread:$0]  %s57_s19, 64, %s59_s21, [#allocation4]  }
  0x15   :  { %148 = dma.done.wait [#allocation4], 64  }
  0x16   :  { %149 = vsyncadd [#allocation4], 4294967232 }
  0x17   :  { %66 = vsyncpa [#allocation3], 1 }
  0x18   :  { %67 = vsyncpa [#allocation6], 1 }
  0x19   :  { %68 = vsyncpa [#allocation4], 1 }

</bundles_post_ra>
